<compile_context>
chip_gen: v6e
topology: v6e:2x2x1
jax: 0.10.0
libtpu: 0.0.40
codegen_flags: <defaults>
</compile_context>

<pallas_src>
import math
import jax
import jax.numpy as jnp
from jax.experimental import pallas as pl
from jax.experimental.pallas import tpu as pltpu


def _lora_kernel(x_ref, w_ref, b_ref, wa_ref, wb_ref, o_ref, acc_ref, a_ref):
    # x_ref:  (tm, tk)   input rows tile
    # w_ref:  (tk, tn)   base weight tile (transposed to [in, out])
    # b_ref:  (1, tn)    bias tile (f32)
    # wa_ref: (tk, Rp)   LoRA down-projection tile (rank padded to 128)
    # wb_ref: (Rp, tn)   LoRA up-projection tile
    # acc_ref:(tm, tn)   f32 accumulator (resident across K)
    # a_ref:  (tm, Rp)   f32 LoRA intermediate (resident across N and K)
    n = pl.program_id(1)
    k = pl.program_id(2)
    nk = pl.num_programs(2)

    @pl.when(k == 0)
    def _():
        # Fold the bias into the accumulator init (one less add at finalize).
        acc_ref[...] = jnp.broadcast_to(b_ref[...], acc_ref.shape)

    @pl.when(jnp.logical_and(n == 0, k == 0))
    def _():
        a_ref[...] = jnp.zeros_like(a_ref)

    x = x_ref[...]

    acc_ref[...] += jnp.dot(x, w_ref[...], preferred_element_type=jnp.float32)

    # LoRA intermediate depends only on the M tile: accumulate it once
    # (n == 0) and reuse for every N tile of this M tile (n, k are serial
    # on one core).
    @pl.when(n == 0)
    def _():
        a_ref[...] += jnp.dot(x, wa_ref[...],
                              preferred_element_type=jnp.float32)

    @pl.when(k == nk - 1)
    def _():
        lora = jnp.dot(a_ref[...].astype(wb_ref.dtype), wb_ref[...],
                       preferred_element_type=jnp.float32)
        o_ref[...] = (acc_ref[...] + lora).astype(o_ref.dtype)


def _round_up(v, m):
    return ((v + m - 1) // m) * m


def lora_forward(x, w, b, wa, wb, *, tm=256, tn=256, tk=512,
                 compute_dtype=None):
    """x: [..., H_in]; w: [H_out, H_in]; b: [H_out]; wa: [r, H_in];
    wb: [H_out, r] (all torch layouts). Returns [..., H_out]."""
    orig_shape = x.shape
    H_in = orig_shape[-1]
    H_out = w.shape[0]
    r = wa.shape[0]
    M = 1
    for d in orig_shape[:-1]:
        M *= d

    cdt = compute_dtype if compute_dtype is not None else x.dtype

    # Shrink tiles for small problems while keeping (8, 128) alignment.
    tm = min(tm, _round_up(M, 8))
    tn = min(tn, _round_up(H_out, 128))
    tk = min(tk, _round_up(H_in, 128))

    Mp = _round_up(M, tm)
    Kp = _round_up(H_in, tk)
    Np = _round_up(H_out, tn)
    Rp = _round_up(r, 128)

    # Flatten rows, transpose weights to [in, out], zero-pad to tile multiples
    # (zero padding contributes nothing to the contractions).
    x2 = jnp.pad(x.reshape(M, H_in).astype(cdt),
                 ((0, Mp - M), (0, Kp - H_in)))
    wT = jnp.pad(w.T.astype(cdt), ((0, Kp - H_in), (0, Np - H_out)))
    waT = jnp.pad(wa.T.astype(cdt), ((0, Kp - H_in), (0, Rp - r)))
    wbT = jnp.pad(wb.T.astype(cdt), ((0, Rp - r), (0, Np - H_out)))
    b2 = jnp.pad(b.reshape(1, H_out).astype(jnp.float32),
                 ((0, 0), (0, Np - H_out)))

    grid = (Mp // tm, Np // tn, Kp // tk)

    out = pl.pallas_call(
        _lora_kernel,
        out_shape=jax.ShapeDtypeStruct((Mp, Np), x.dtype),
        grid_spec=pltpu.PrefetchScalarGridSpec(
            num_scalar_prefetch=0,
            grid=grid,
            in_specs=[
                pl.BlockSpec((tm, tk), lambda m, n, k: (m, k)),   # x tile
                pl.BlockSpec((tk, tn), lambda m, n, k: (k, n)),   # W^T tile
                pl.BlockSpec((1, tn), lambda m, n, k: (0, n)),    # bias tile
                # Wa^T is only consumed on the n == 0 pass; pin its block
                # index for n > 0 so the pipeline skips the re-fetch of all
                # K tiles of Wa for every subsequent N tile.
                pl.BlockSpec((tk, Rp),
                             lambda m, n, k: (jnp.where(n == 0, k, 0), 0)),
                pl.BlockSpec((Rp, tn), lambda m, n, k: (0, n)),   # Wb^T tile
            ],
            out_specs=pl.BlockSpec((tm, tn), lambda m, n, k: (m, n)),
            scratch_shapes=[
                pltpu.VMEM((tm, tn), jnp.float32),   # base accumulator
                pltpu.VMEM((tm, Rp), jnp.float32),   # LoRA intermediate
            ],
        ),
        compiler_params=pltpu.CompilerParams(
            # n must stay serial on one core so the a_ref scratch computed at
            # n == 0 is visible for the remaining N tiles of this M tile.
            dimension_semantics=("parallel", "arbitrary", "arbitrary")),
    )(x2, wT, b2, waT, wbT)

    out = out[:M, :H_out]
    return out.reshape(*orig_shape[:-1], H_out)


if __name__ == "__main__":
    # Small shapes consistent with the module: hidden=32, LoRA rank=4.
    B, S, H, R = 2, 8, 32, 4
    key = jax.random.PRNGKey(0)
    kx, kw, kb, ka, kkb = jax.random.split(key, 5)

    x = jax.random.normal(kx, (B, S, H), dtype=jnp.float32)

    bound = 1.0 / math.sqrt(H)
    w = jax.random.uniform(kw, (H, H), minval=-bound, maxval=bound,
                           dtype=jnp.float32)          # base weight [out, in]
    b = jax.random.uniform(kb, (H,), minval=-bound, maxval=bound,
                           dtype=jnp.float32)          # base bias
    wa = jax.random.normal(ka, (R, H), dtype=jnp.float32) * (1.0 / math.sqrt(H))
    wb = jax.random.normal(kkb, (H, R), dtype=jnp.float32) * 0.01

    y = lora_forward(x, w, b, wa, wb)
    y = jax.block_until_ready(y)

    # Pure-JAX reference for correctness (fp32 path).
    ref = (x @ w.T + b) + ((x @ wa.T) @ wb.T)
    assert y.shape == (B, S, H)
    assert jnp.allclose(y, ref, atol=1e-5, rtol=1e-5), "mismatch vs reference"

    print("KERNEL_OK")
</pallas_src>

<mosaic_0001>
module attributes {stable_mosaic.version = 11 : i64} {
  func.func @_lora_kernel(%arg0: i32, %arg1: i32, %arg2: i32, %arg3: memref<16x128xf32, #tpu.memory_space<vmem>>, %arg4: memref<128x128xf32, #tpu.memory_space<vmem>>, %arg5: memref<1x128xf32, #tpu.memory_space<vmem>>, %arg6: memref<128x128xf32, #tpu.memory_space<vmem>>, %arg7: memref<128x128xf32, #tpu.memory_space<vmem>>, %arg8: memref<16x128xf32, #tpu.memory_space<vmem>>, %arg9: memref<16x128xf32, #tpu.memory_space<vmem>>, %arg10: memref<16x128xf32, #tpu.memory_space<vmem>>) attributes {dimension_semantics = [#tpu.dimension_semantics<parallel>, #tpu.dimension_semantics<arbitrary>, #tpu.dimension_semantics<arbitrary>], iteration_bounds = array<i64: 1, 1, 1>, scalar_prefetch = 0 : i64, scratch_operands = 2 : i64, tpu.core_type = #tpu.core_type<tc>, window_params = [{transform_indices = @transform_0, window_bounds = array<i64: 16, 128>}, {transform_indices = @transform_1, window_bounds = array<i64: 128, 128>}, {transform_indices = @transform_2, window_bounds = array<i64: 1, 128>}, {transform_indices = @transform_3, window_bounds = array<i64: 128, 128>}, {transform_indices = @transform_4, window_bounds = array<i64: 128, 128>}, {transform_indices = @transform_5, window_bounds = array<i64: 16, 128>}]} {
    %c0_i32 = arith.constant 0 : i32
    %0 = arith.cmpi eq, %arg2, %c0_i32 : i32
    %1 = arith.extui %0 : i1 to i32
    %c0_i32_0 = arith.constant 0 : i32
    %2 = arith.cmpi ne, %1, %c0_i32_0 : i32
    scf.if %2 {
      %c0_15 = arith.constant 0 : index
      %c0_16 = arith.constant 0 : index
      %20 = vector.load %arg5[%c0_15, %c0_16] : memref<1x128xf32, #tpu.memory_space<vmem>>, vector<1x128xf32>
      %21 = vector.shape_cast %20 : vector<1x128xf32> to vector<1x128xf32>
      %22 = vector.broadcast %21 : vector<1x128xf32> to vector<16x128xf32>
      %c0_17 = arith.constant 0 : index
      %c0_18 = arith.constant 0 : index
      %23 = vector.load %arg9[%c0_17, %c0_18] : memref<16x128xf32, #tpu.memory_space<vmem>>, vector<16x128xf32>
      tpu.vector_store %arg9[%c0_17, %c0_18], %22 {strides = array<i32>} : memref<16x128xf32, #tpu.memory_space<vmem>>, vector<16x128xf32>,
    } else {
    }
    %c0_i32_1 = arith.constant 0 : i32
    %3 = arith.cmpi eq, %arg1, %c0_i32_1 : i32
    %c0_i32_2 = arith.constant 0 : i32
    %4 = arith.cmpi eq, %arg2, %c0_i32_2 : i32
    %5 = arith.andi %3, %4 : i1
    %6 = arith.extui %5 : i1 to i32
    %c0_i32_3 = arith.constant 0 : i32
    %7 = arith.cmpi ne, %6, %c0_i32_3 : i32
    scf.if %7 {
      %cst_15 = arith.constant 0.000000e+00 : f32
      %20 = vector.broadcast %cst_15 : f32 to vector<16x128xf32>
      %c0_16 = arith.constant 0 : index
      %c0_17 = arith.constant 0 : index
      %21 = vector.load %arg10[%c0_16, %c0_17] : memref<16x128xf32, #tpu.memory_space<vmem>>, vector<16x128xf32>
      tpu.vector_store %arg10[%c0_16, %c0_17], %20 {strides = array<i32>} : memref<16x128xf32, #tpu.memory_space<vmem>>, vector<16x128xf32>,
    } else {
    }
    %c0 = arith.constant 0 : index
    %c0_4 = arith.constant 0 : index
    %8 = vector.load %arg3[%c0, %c0_4] : memref<16x128xf32, #tpu.memory_space<vmem>>, vector<16x128xf32>
    %c0_5 = arith.constant 0 : index
    %c0_6 = arith.constant 0 : index
    %9 = vector.load %arg9[%c0_5, %c0_6] : memref<16x128xf32, #tpu.memory_space<vmem>>, vector<16x128xf32>
    %c0_7 = arith.constant 0 : index
    %c0_8 = arith.constant 0 : index
    %10 = vector.load %arg4[%c0_7, %c0_8] : memref<128x128xf32, #tpu.memory_space<vmem>>, vector<128x128xf32>
    %cst = arith.constant dense<0.000000e+00> : vector<16x128xf32>
    %11 = tpu.matmul %8, %10, %cst {dimension_numbers = #tpu.dot_dimension_numbers<[1], [0], [0], [1], [0, 0, 1, 1], [], []>} : vector<16x128xf32>, vector<128x128xf32>, vector<16x128xf32> -> vector<16x128xf32>
    %12 = arith.addf %9, %11 : vector<16x128xf32>
    %c0_9 = arith.constant 0 : index
    %c0_10 = arith.constant 0 : index
    %13 = vector.load %arg9[%c0_9, %c0_10] : memref<16x128xf32, #tpu.memory_space<vmem>>, vector<16x128xf32>
    tpu.vector_store %arg9[%c0_9, %c0_10], %12 {strides = array<i32>} : memref<16x128xf32, #tpu.memory_space<vmem>>, vector<16x128xf32>,
    %c0_i32_11 = arith.constant 0 : i32
    %14 = arith.cmpi eq, %arg1, %c0_i32_11 : i32
    %15 = arith.extui %14 : i1 to i32
    %c0_i32_12 = arith.constant 0 : i32
    %16 = arith.cmpi ne, %15, %c0_i32_12 : i32
    scf.if %16 {
      %c0_15 = arith.constant 0 : index
      %c0_16 = arith.constant 0 : index
      %20 = vector.load %arg10[%c0_15, %c0_16] : memref<16x128xf32, #tpu.memory_space<vmem>>, vector<16x128xf32>
      %c0_17 = arith.constant 0 : index
      %c0_18 = arith.constant 0 : index
      %21 = vector.load %arg6[%c0_17, %c0_18] : memref<128x128xf32, #tpu.memory_space<vmem>>, vector<128x128xf32>
      %cst_19 = arith.constant dense<0.000000e+00> : vector<16x128xf32>
      %22 = tpu.matmul %8, %21, %cst_19 {dimension_numbers = #tpu.dot_dimension_numbers<[1], [0], [0], [1], [0, 0, 1, 1], [], []>} : vector<16x128xf32>, vector<128x128xf32>, vector<16x128xf32> -> vector<16x128xf32>
      %23 = arith.addf %20, %22 : vector<16x128xf32>
      %c0_20 = arith.constant 0 : index
      %c0_21 = arith.constant 0 : index
      %24 = vector.load %arg10[%c0_20, %c0_21] : memref<16x128xf32, #tpu.memory_space<vmem>>, vector<16x128xf32>
      tpu.vector_store %arg10[%c0_20, %c0_21], %23 {strides = array<i32>} : memref<16x128xf32, #tpu.memory_space<vmem>>, vector<16x128xf32>,
    } else {
    }
    %c0_i32_13 = arith.constant 0 : i32
    %17 = arith.cmpi eq, %arg2, %c0_i32_13 : i32
    %18 = arith.extui %17 : i1 to i32
    %c0_i32_14 = arith.constant 0 : i32
    %19 = arith.cmpi ne, %18, %c0_i32_14 : i32
    scf.if %19 {
      %c0_15 = arith.constant 0 : index
      %c0_16 = arith.constant 0 : index
      %20 = vector.load %arg10[%c0_15, %c0_16] : memref<16x128xf32, #tpu.memory_space<vmem>>, vector<16x128xf32>
      %c0_17 = arith.constant 0 : index
      %c0_18 = arith.constant 0 : index
      %21 = vector.load %arg7[%c0_17, %c0_18] : memref<128x128xf32, #tpu.memory_space<vmem>>, vector<128x128xf32>
      %cst_19 = arith.constant dense<0.000000e+00> : vector<16x128xf32>
      %22 = tpu.matmul %20, %21, %cst_19 {dimension_numbers = #tpu.dot_dimension_numbers<[1], [0], [0], [1], [0, 0, 1, 1], [], []>} : vector<16x128xf32>, vector<128x128xf32>, vector<16x128xf32> -> vector<16x128xf32>
      %c0_20 = arith.constant 0 : index
      %c0_21 = arith.constant 0 : index
      %23 = vector.load %arg9[%c0_20, %c0_21] : memref<16x128xf32, #tpu.memory_space<vmem>>, vector<16x128xf32>
      %24 = arith.addf %23, %22 : vector<16x128xf32>
      %c0_22 = arith.constant 0 : index
      %c0_23 = arith.constant 0 : index
      %25 = vector.load %arg8[%c0_22, %c0_23] : memref<16x128xf32, #tpu.memory_space<vmem>>, vector<16x128xf32>
      tpu.vector_store %arg8[%c0_22, %c0_23], %24 {strides = array<i32>} : memref<16x128xf32, #tpu.memory_space<vmem>>, vector<16x128xf32>,
    } else {
    }
    return
  }
  func.func @transform_0(%arg0: i32, %arg1: i32, %arg2: i32) -> (i32, i32) {
    %c0_i32 = arith.constant 0 : i32
    return %arg0, %arg2 : i32, i32
  }
  func.func @transform_1(%arg0: i32, %arg1: i32, %arg2: i32) -> (i32, i32) {
    %c0_i32 = arith.constant 0 : i32
    return %arg2, %arg1 : i32, i32
  }
  func.func @transform_2(%arg0: i32, %arg1: i32, %arg2: i32) -> (i32, i32) {
    %c0_i32 = arith.constant 0 : i32
    %c0_i32_0 = arith.constant 0 : i32
    return %c0_i32, %arg1 : i32, i32
  }
  func.func @transform_3(%arg0: i32, %arg1: i32, %arg2: i32) -> (i32, i32) {
    %c0_i32 = arith.constant 0 : i32
    %0 = arith.cmpi eq, %arg1, %c0_i32 : i32
    %c0_i32_0 = arith.constant 0 : i32
    %1 = arith.select %0, %arg2, %c0_i32_0 : i32
    %c0_i32_1 = arith.constant 0 : i32
    %c0_i32_2 = arith.constant 0 : i32
    return %1, %c0_i32_1 : i32, i32
  }
  func.func @transform_4(%arg0: i32, %arg1: i32, %arg2: i32) -> (i32, i32) {
    %c0_i32 = arith.constant 0 : i32
    %c0_i32_0 = arith.constant 0 : i32
    return %c0_i32, %arg1 : i32, i32
  }
  func.func @transform_5(%arg0: i32, %arg1: i32, %arg2: i32) -> (i32, i32) {
    %c0_i32 = arith.constant 0 : i32
    return %arg0, %arg1 : i32, i32
  }
}

</mosaic_0001>

<bundles_post_ra>
// kernel: tpu_custom_call.1
= control target key start
LH: loop header
LB: loop body
LE: loop exit
PB: predicated region body
PF: predicated region fallthrough
CT: control target
= control target key end

     0   :  { %10 = vsyncpa [#allocation5], 0  ;;  %s775_s0 = inlined_call_operand.hbm [shape: f32[16,128], index: 0, kind: input, shape index: {}]   ;;  %s776_s1 = inlined_call_operand.hbm [shape: f32[128,128], index: 1, kind: input, shape index: {}]   ;;  %s777_s2 = inlined_call_operand.vmem [shape: f32[1,128], index: 2, kind: input, shape index: {}]   ;;  %s778_s3 = inlined_call_operand.hbm [shape: f32[128,128], index: 3, kind: input, shape index: {}]   ;;  %s779_s4 = inlined_call_operand.hbm [shape: f32[128,128], index: 4, kind: input, shape index: {}]   ;;  %s780_s5 = inlined_call_operand.hbm [shape: f32[16,128], index: 5, kind: output, shape index: {}]  }
   0x1   :  { %11 = vsyncpa [#allocation8], 0 }
   0x2   :  { %12 = vsyncpa [#allocation11], 0 }
   0x3   :  { %13 = vsyncpa [#allocation6], 0  ;;  %s701_s18 = smov [#allocation7]   ;;  %s702_s20 = smov [#allocation4]  }
   0x4   :  { %s31_s19 = sshll.u32 %s701_s18, 4  ;;  %s19_s21 = sshll.u32 %s702_s20, 4  ;;  %s32_s19 = int_to_ptr.vmem [resolvable:$true] %s31_s19  ;;  %s20_s21 = int_to_ptr.vmem [resolvable:$true] %s19_s21 }
   0x5   :  { %s601_s22 = scalar_lea.vmem %s32_s19, 2048  ;;  %p606_p1 = scmp.lt.s32.totalorder %s32_s19, %s32_s19 }
   0x6   :  { %p602_p0 = scmp.ne.s32.totalorder %s32_s19, %s601_s22  ;;  %p607_p2 = scmp.lt.s32.totalorder %s601_s22, %s601_s22 }
   0x8   :  { %p608_p3 = por %p607_p2, %p606_p1 }
   0xa   :  { %p609_p4 = pnand %p608_p3, %p602_p0 }
   0xc   :  { %612 = shalt.err (!%p609_p4)
}
   0xd   :  { %s703_s23 = smov 128   ;;  %s704_s24 = smov 8  }
   0xe   :  { %37 = dma.hbm_to_vmem [thread:$0]  %s776_s1, 2048, %s32_s19, [#allocation8], %s703_s23, %s703_s23, %s704_s24  }
   0xf   :  { %s621_s27 = scalar_lea.vmem %s20_s21, 256  ;;  %p626_p6 = scmp.lt.s32.totalorder %s20_s21, %s20_s21 }
  0x10   :  { %p622_p5 = scmp.ne.s32.totalorder %s20_s21, %s621_s27  ;;  %p627_p7 = scmp.lt.s32.totalorder %s621_s27, %s621_s27 }
  0x12   :  { %p628_p8 = por %p627_p7, %p626_p6 }
  0x14   :  { %p629_p9 = pnand %p628_p8, %p622_p5 }
  0x16   :  { %632 = shalt.err (!%p629_p9)
}
  0x17   :  { %25 = dma.hbm_to_vmem [thread:$0]  %s775_s0, 256, %s20_s21, [#allocation5], %s703_s23, %s703_s23, %s704_s24  }
  0x18   :  { %s705_s30 = smov [#allocation9]   ;;  %s706_s7 = smov [#allocation10]  }
  0x19   :  { %s50_s6 = sshll.u32 %s705_s30, 4  ;;  %s62_s8 = sshll.u32 %s706_s7, 4  ;;  %s51_s6 = int_to_ptr.vmem [resolvable:$true] %s50_s6  ;;  %s63_s8 = int_to_ptr.vmem [resolvable:$true] %s62_s8 }
  0x1a   :  { %s641_s1 = scalar_lea.vmem %s51_s6, 2048  ;;  %p646_p11 = scmp.lt.s32.totalorder %s51_s6, %s51_s6 }
  0x1b   :  { %p642_p10 = scmp.ne.s32.totalorder %s51_s6, %s641_s1  ;;  %p647_p12 = scmp.lt.s32.totalorder %s641_s1, %s641_s1 }
  0x1d   :  { %p648_p13 = por %p647_p12, %p646_p11 }
  0x1f   :  { %p649_p0 = pnand %p648_p13, %p642_p10 }
  0x21   :  { %652 = shalt.err (!%p649_p0)
}
  0x22   :  { %56 = dma.hbm_to_vmem [thread:$0]  %s778_s3, 2048, %s51_s6, [#allocation8], %s703_s23, %s703_s23, %s704_s24  }
  0x23   :  { %s661_s0 = scalar_lea.vmem %s63_s8, 2048  ;;  %p666_p2 = scmp.lt.s32.totalorder %s63_s8, %s63_s8 }
  0x24   :  { %p662_p1 = scmp.ne.s32.totalorder %s63_s8, %s661_s0  ;;  %p667_p3 = scmp.lt.s32.totalorder %s661_s0, %s661_s0 }
  0x26   :  { %p668_p4 = por %p667_p3, %p666_p2 }
  0x28   :  { %p669_p5 = pnand %p668_p4, %p662_p1 }
  0x2a   :  { %672 = shalt.err (!%p669_p5)
}
  0x2b   :  { %68 = dma.hbm_to_vmem [thread:$0]  %s779_s4, 2048, %s63_s8, [#allocation11], %s703_s23, %s703_s23, %s704_s24  }
  0x2c   :  { %693 = dma.done.wait [#allocation5], 256  }
  0x2d   :  { %694 = vsyncadd [#allocation5], 4294967040 }
  0x2e   :  { %695 = dma.done.wait [#allocation8], 4096  }
  0x2f   :  { %696 = vsyncadd [#allocation8], 4294963200 }
  0x30   :  { %697 = dma.done.wait [#allocation11], 2048  }
  0x31   :  { %698 = vsyncadd [#allocation11], 4294965248  ;;  %v223_v0 = vld [vmem:[#allocation9 + $0x78] sm:$0xff]  ;;  %v222_v1 = vld [vmem:[#allocation9 + $0x70] sm:$0xff]  ;;  %s707_s13 = smov [#allocation12]  }
  0x32   :  { %516 = vmatprep.subr.mxu1 %v223_v0  ;;  %v221_v2 = vld [vmem:[#allocation9 + $0x68] sm:$0xff]  ;;  %v220_v3 = vld [vmem:[#allocation9 + $0x60] sm:$0xff]  ;;  %v762_v4 = vld [vmem:[#allocation4] sm:$0xff]  ;;  %s410_s14 = sshll.u32 %s707_s13, 4  ;;  %s411_s14 = int_to_ptr.vmem [resolvable:$true] %s410_s14 }
  0x33   :  { %517 = vmatpush3.msra.mxu1 %v223_v0  ;;  %v219_v5 = vld [vmem:[#allocation9 + $0x58] sm:$0xff]  ;;  %548 = vmatprep.mubr.f32.mxu1 %v762_v4  ;;  %v122_v7 = vld [vmem:[#allocation7 + $0x70] sm:$0xff]  ;;  %v121_v9 = vld [vmem:[#allocation7 + $0x68] sm:$0xff]  ;;  %s673_s15 = scalar_lea.vmem %s411_s14, 256  ;;  %p678_p7 = scmp.lt.s32.totalorder %s411_s14, %s411_s14 }
  0x34   :  { %518 = vmatprep.subr.mxu1 %v222_v1  ;;  %v123_v6 = vld [vmem:[#allocation7 + $0x78] sm:$0xff]  ;;  %v218_v8 = vld [vmem:[#allocation9 + $0x50] sm:$0xff]  ;;  %v217_v10 = vld [vmem:[#allocation9 + $0x48] sm:$0xff]  ;;  %513 = vmatprep.mubr.f32.mxu0 %v762_v4  ;;  %p674_p6 = scmp.ne.s32.totalorder %s411_s14, %s673_s15  ;;  %p679_p8 = scmp.lt.s32.totalorder %s673_s15, %s673_s15 }
  0x35   :  { %519 = vmatpush3.msra.mxu1 %v222_v1  ;;  %481 = vmatprep.subr.mxu0 %v123_v6  ;;  %v120_v11 = vld [vmem:[#allocation7 + $0x60] sm:$0xff]  ;;  %v119_v13 = vld [vmem:[#allocation7 + $0x58] sm:$0xff]  ;;  %v118_v15 = vld [vmem:[#allocation7 + $0x50] sm:$0xff] }
  0x36   :  { %520 = vmatprep.subr.mxu1 %v221_v2  ;;  %482 = vmatpush3.msra.mxu0 %v123_v6  ;;  %v216_v12 = vld [vmem:[#allocation9 + $0x40] sm:$0xff]  ;;  %v215_v14 = vld [vmem:[#allocation9 + $0x38] sm:$0xff]  ;;  %v214_v16 = vld [vmem:[#allocation9 + $0x30] sm:$0xff]  ;;  %p680_p9 = por %p679_p8, %p678_p7 }
  0x37   :  { %521 = vmatpush3.msra.mxu1 %v221_v2  ;;  %483 = vmatprep.subr.mxu0 %v122_v7  ;;  %v117_v17 = vld [vmem:[#allocation7 + $0x48] sm:$0xff]  ;;  %v116_v19 = vld [vmem:[#allocation7 + $0x40] sm:$0xff]  ;;  %v115_v21 = vld [vmem:[#allocation7 + $0x38] sm:$0xff] }
  0x38   :  { %522 = vmatprep.subr.mxu1 %v220_v3  ;;  %484 = vmatpush3.msra.mxu0 %v122_v7  ;;  %v213_v18 = vld [vmem:[#allocation9 + $0x28] sm:$0xff]  ;;  %v212_v20 = vld [vmem:[#allocation9 + $0x20] sm:$0xff]  ;;  %v211_v22 = vld [vmem:[#allocation9 + $0x18] sm:$0xff]  ;;  %p681_p10 = pnand %p680_p9, %p674_p6 }
  0x39   :  { %523 = vmatpush3.msra.mxu1 %v220_v3  ;;  %485 = vmatprep.subr.mxu0 %v121_v9  ;;  %v114_v23 = vld [vmem:[#allocation7 + $0x30] sm:$0xff]  ;;  %v113_v25 = vld [vmem:[#allocation7 + $0x28] sm:$0xff]  ;;  %v112_v27 = vld [vmem:[#allocation7 + $0x20] sm:$0xff] }
  0x3a   :  { %524 = vmatprep.subr.mxu1 %v219_v5  ;;  %486 = vmatpush3.msra.mxu0 %v121_v9  ;;  %v210_v24 = vld [vmem:[#allocation9 + $0x10] sm:$0xff]  ;;  %v209_v26 = vld [vmem:[#allocation9 + $0x8] sm:$0xff]  ;;  %v208_v28 = vld [vmem:[#allocation9] sm:$0xff] }
  0x3b   :  { %525 = vmatpush3.msra.mxu1 %v219_v5  ;;  %487 = vmatprep.subr.mxu0 %v120_v11  ;;  %v111_v29 = vld [vmem:[#allocation7 + $0x18] sm:$0xff]  ;;  %v110_v31 = vld [vmem:[#allocation7 + $0x10] sm:$0xff]  ;;  %v109_v32 = vld [vmem:[#allocation7 + $0x8] sm:$0xff] }
  0x3c   :  { %526 = vmatprep.subr.mxu1 %v218_v8  ;;  %488 = vmatpush3.msra.mxu0 %v120_v11  ;;  %v105_v30 = vld [vmem:[#allocation4 + $0x8] sm:$0xff]  ;;  %v108_v33 = vld [vmem:[#allocation7] sm:$0xff]  ;;  %v322_v35 = vld [vmem:[#allocation10 + $0x70] sm:$0xff] }
  0x3d   :  { %527 = vmatpush3.msra.mxu1 %v218_v8  ;;  %489 = vmatprep.subr.mxu0 %v119_v13  ;;  %v323_v34 = vld [vmem:[#allocation10 + $0x78] sm:$0xff]  ;;  %v321_v36 = vld [vmem:[#allocation10 + $0x68] sm:$0xff]  ;;  %v320_v37 = vld [vmem:[#allocation10 + $0x60] sm:$0xff] }
  0x3e   :  { %528 = vmatprep.subr.mxu1 %v217_v10  ;;  %490 = vmatpush3.msra.mxu0 %v119_v13  ;;  %v319_v38 = vld [vmem:[#allocation10 + $0x58] sm:$0xff]  ;;  %v318_v39 = vld [vmem:[#allocation10 + $0x50] sm:$0xff]  ;;  %v317_v40 = vld [vmem:[#allocation10 + $0x48] sm:$0xff] }
  0x3f   :  { %529 = vmatpush3.msra.mxu1 %v217_v10  ;;  %491 = vmatprep.subr.mxu0 %v118_v15  ;;  %v316_v41 = vld [vmem:[#allocation10 + $0x40] sm:$0xff]  ;;  %v315_v42 = vld [vmem:[#allocation10 + $0x38] sm:$0xff]  ;;  %v314_v43 = vld [vmem:[#allocation10 + $0x30] sm:$0xff] }
  0x40   :  { %530 = vmatprep.subr.mxu1 %v216_v12  ;;  %492 = vmatpush3.msra.mxu0 %v118_v15  ;;  %v313_v44 = vld [vmem:[#allocation10 + $0x28] sm:$0xff]  ;;  %v312_v45 = vld [vmem:[#allocation10 + $0x20] sm:$0xff]  ;;  %v311_v46 = vld [vmem:[#allocation10 + $0x18] sm:$0xff] }
  0x41   :  { %531 = vmatpush3.msra.mxu1 %v216_v12  ;;  %493 = vmatprep.subr.mxu0 %v117_v17  ;;  %v310_v47 = vld [vmem:[#allocation10 + $0x10] sm:$0xff]  ;;  %v309_v48 = vld [vmem:[#allocation10 + $0x8] sm:$0xff]  ;;  %v308_v49 = vld [vmem:[#allocation10] sm:$0xff] }
  0x42   :  { %532 = vmatprep.subr.mxu1 %v215_v14  ;;  %494 = vmatpush3.msra.mxu0 %v117_v17  ;;  %v426_v53 = vld [vmem:[%s777_s2] ss:$0 sm:$0xff] }
  0x43   :  { %533 = vmatpush3.msra.mxu1 %v215_v14  ;;  %495 = vmatprep.subr.mxu0 %v116_v19 }
  0x44   :  { %534 = vmatprep.subr.mxu1 %v214_v16  ;;  %496 = vmatpush3.msra.mxu0 %v116_v19 }
  0x45   :  { %535 = vmatpush3.msra.mxu1 %v214_v16  ;;  %497 = vmatprep.subr.mxu0 %v115_v21 }
  0x46   :  { %536 = vmatprep.subr.mxu1 %v213_v18  ;;  %498 = vmatpush3.msra.mxu0 %v115_v21 }
  0x47   :  { %537 = vmatpush3.msra.mxu1 %v213_v18  ;;  %499 = vmatprep.subr.mxu0 %v114_v23 }
  0x48   :  { %538 = vmatprep.subr.mxu1 %v212_v20  ;;  %500 = vmatpush3.msra.mxu0 %v114_v23 }
  0x49   :  { %539 = vmatpush3.msra.mxu1 %v212_v20  ;;  %501 = vmatprep.subr.mxu0 %v113_v25 }
  0x4a   :  { %540 = vmatprep.subr.mxu1 %v211_v22  ;;  %502 = vmatpush3.msra.mxu0 %v113_v25 }
  0x4b   :  { %541 = vmatpush3.msra.mxu1 %v211_v22  ;;  %503 = vmatprep.subr.mxu0 %v112_v27 }
  0x4c   :  { %542 = vmatprep.subr.mxu1 %v210_v24  ;;  %504 = vmatpush3.msra.mxu0 %v112_v27 }
  0x4d   :  { %543 = vmatpush3.msra.mxu1 %v210_v24  ;;  %505 = vmatprep.subr.mxu0 %v111_v29 }
  0x4e   :  { %544 = vmatprep.subr.mxu1 %v209_v26  ;;  %506 = vmatpush3.msra.mxu0 %v111_v29 }
  0x4f   :  { %545 = vmatpush3.msra.mxu1 %v209_v26  ;;  %507 = vmatprep.subr.mxu0 %v110_v31 }
  0x50   :  { %546 = vmatprep.subr.mxu1 %v208_v28  ;;  %508 = vmatpush3.msra.mxu0 %v110_v31 }
  0x51   :  { %547 = vmatpush3.msra.mxu1 %v208_v28  ;;  %509 = vmatprep.subr.mxu0 %v109_v32 }
  0x52   :  { %549 = vmatmul.mubr.f32.vlgmr.msra.gmra.mxu1 %v105_v30  ;;  %510 = vmatpush3.msra.mxu0 %v109_v32 }
  0x53   :  { %511 = vmatprep.subr.mxu0 %v108_v33 }
  0x54   :  { %512 = vmatpush3.msra.mxu0 %v108_v33 }
  0x55   :  { %514 = vmatmul.mubr.f32.vlgmr.msra.gmra.mxu0 %v105_v30  ;;  %551 = vmatprep.subr.mxu0 %v323_v34 }
  0x56   :  { %552 = vmatpush3.msra.mxu0 %v323_v34 }
  0x57   :  { %553 = vmatprep.subr.mxu0 %v322_v35 }
  0x58   :  { %554 = vmatpush3.msra.mxu0 %v322_v35 }
  0x59   :  { %555 = vmatprep.subr.mxu0 %v321_v36 }
  0x5a   :  { %556 = vmatpush3.msra.mxu0 %v321_v36 }
  0x5b   :  { %557 = vmatprep.subr.mxu0 %v320_v37 }
  0x5c   :  { %558 = vmatpush3.msra.mxu0 %v320_v37 }
  0x5d   :  { %559 = vmatprep.subr.mxu0 %v319_v38 }
  0x5e   :  { %560 = vmatpush3.msra.mxu0 %v319_v38 }
  0x5f   :  { %561 = vmatprep.subr.mxu0 %v318_v39 }
  0x60   :  { %562 = vmatpush3.msra.mxu0 %v318_v39 }
  0x61   :  { %563 = vmatprep.subr.mxu0 %v317_v40 }
  0x62   :  { %564 = vmatpush3.msra.mxu0 %v317_v40 }
  0x63   :  { %565 = vmatprep.subr.mxu0 %v316_v41 }
  0x64   :  { %566 = vmatpush3.msra.mxu0 %v316_v41 }
  0x65   :  { %567 = vmatprep.subr.mxu0 %v315_v42 }
  0x66   :  { %568 = vmatpush3.msra.mxu0 %v315_v42 }
  0x67   :  { %569 = vmatprep.subr.mxu0 %v314_v43 }
  0x68   :  { %570 = vmatpush3.msra.mxu0 %v314_v43 }
  0x69   :  { %571 = vmatprep.subr.mxu0 %v313_v44 }
  0x6a   :  { %572 = vmatpush3.msra.mxu0 %v313_v44 }
  0x6b   :  { %573 = vmatprep.subr.mxu0 %v312_v45 }
  0x6c   :  { %574 = vmatpush3.msra.mxu0 %v312_v45 }
  0x6d   :  { %575 = vmatprep.subr.mxu0 %v311_v46 }
  0x6e   :  { %576 = vmatpush3.msra.mxu0 %v311_v46 }
  0x6f   :  { %577 = vmatprep.subr.mxu0 %v310_v47 }
  0x70   :  { %578 = vmatpush3.msra.mxu0 %v310_v47 }
  0x71   :  { %579 = vmatprep.subr.mxu0 %v309_v48 }
  0x72   :  { %580 = vmatpush3.msra.mxu0 %v309_v48 }
  0x73   :  { %581 = vmatprep.subr.mxu0 %v308_v49 }
  0x74   :  { %582 = vmatpush3.msra.mxu0 %v308_v49 }
 0x112   :  { %v550_v50 = vpop.f32.mrf.mxu1 }
 0x114   :  { %v290_v51 = vpop.f32.mrf.mxu1 }
 0x115   :  { %583 = vmatprep.mubr.f32.mxu0 %v290_v51  ;;  %v515_v52 = vpop.f32.mrf.mxu0 }
 0x116   :  { %584 = vmatmul.mubr.f32.vlgmr.msra.gmra.mxu0 %v550_v50  ;;  %v200_v55 = vadd.f32 %v515_v52, %v426_v53 }
 0x117   :  { %v190_v54 = vpop.f32.mrf.mxu0 }
 0x118   :  { %v199_v57 = vadd.f32 %v426_v53, %v190_v54 }
 0x1d6   :  { %v585_v56 = vpop.f32.mrf.mxu0 }
 0x1d7   :  { %v402_v58 = vadd.f32 %v585_v56, %v200_v55 }
 0x1d8   :  { %v390_v59 = vpop.f32.mrf.mxu0 }
 0x1d9   :  { %404 = vst [vmem:[#allocation12 + $0x8] sm:$0xff] %v402_v58  ;;  %v401_v60 = vadd.f32 %v390_v59, %v199_v57 }
 0x1db   :  { %403 = vst [vmem:[#allocation12] sm:$0xff] %v401_v60 }
 0x1dc   :  { %684 = shalt.err (!%p681_p10)
}
 0x1dd   :  { %416 = dma.vmem_to_hbm [thread:$0]  %s411_s14, 256, %s780_s5, [#allocation6], %s703_s23, %s703_s23, %s704_s24  }
 0x1de   :  { %699 = dma.done.wait [#allocation6], 256  }
 0x1df   :  { %700 = vsyncadd [#allocation6], 4294967040 }
 0x1e0   :  { %420 = vsyncpa [#allocation5], 1 }
 0x1e1   :  { %421 = vsyncpa [#allocation8], 1 }
 0x1e2   :  { %422 = vsyncpa [#allocation11], 1 }
 0x1e3   :  { %423 = vsyncpa [#allocation6], 1 }

</bundles_post_ra>
